<compile_context>
chip_gen: v7x
topology: tpu7x:2x2x1
jax: 0.10.0
libtpu: 0.0.40
codegen_flags: <defaults>
</compile_context>

<pallas_src>
import functools

import jax
import jax.numpy as jnp
from jax import lax
from jax.experimental import pallas as pl
from jax.experimental.pallas import tpu as pltpu


def _round_up(a, b):
    return (a + b - 1) // b * b


def _gram_softmax_m_kernel(xa_ref, wqk_ref, wvg_ref, m_ref, acc_ref, *,
                           num_heads, head_dim):
    """Pass 1: accumulate per-head channel Grams over the N tiles; at the last
    tile apply softmax and fold the (gamma-scaled) V weights into one
    per-batch mixing matrix M = softmax(Gram) @ (gamma * Wv_aug)."""
    C = num_heads * head_dim
    n = pl.program_id(1)

    @pl.when(n == 0)
    def _():
        acc_ref[...] = jnp.zeros_like(acc_ref)

    # Fused Q/K 1x1 conv for this lane tile: bf16 MXU operands, f32 accum.
    xa = xa_ref[0].astype(jnp.bfloat16)                        # (C+1, TN)
    qk = jnp.dot(wqk_ref[...], xa,
                 preferred_element_type=jnp.float32)           # (2C, TN) f32

    # Per-head Gram q_h @ k_h^T accumulated in a VMEM scratch accumulator.
    for h in range(num_heads):
        s = h * head_dim
        q_h = qk[s:s + head_dim, :]                            # (hd, TN)
        k_h = qk[C + s:C + s + head_dim, :]                    # (hd, TN)
        acc_ref[s:s + head_dim, :] += lax.dot_general(
            q_h, k_h, (((1,), (1,)), ((), ())),
            preferred_element_type=jnp.float32)                # (hd, hd)

    @pl.when(n == pl.num_programs(1) - 1)
    def _():
        g = acc_ref[...]                                       # (C, hd)
        mx = jnp.max(g, axis=-1, keepdims=True)
        e = jnp.exp(g - mx)
        attn = e * pl.reciprocal(jnp.sum(e, axis=-1, keepdims=True),
                                 approx=True)
        attn = attn.astype(jnp.bfloat16)
        for h in range(num_heads):
            s = h * head_dim
            m_ref[0, s:s + head_dim, :] = jnp.dot(
                attn[s:s + head_dim, :], wvg_ref[s:s + head_dim, :],
                preferred_element_type=jnp.float32)            # (hd, C+1)


def _apply_kernel(xa_ref, m_ref, o_ref):
    """Pass 2: out = M @ x_aug + x  (single matmul, lane-dense full store)."""
    C = o_ref.shape[1]
    xa = xa_ref[0]                                             # (C+1, TN) f32
    o = jnp.dot(m_ref[0].astype(jnp.bfloat16), xa.astype(jnp.bfloat16),
                preferred_element_type=jnp.float32)            # (C, TN) f32
    o_ref[0] = o + xa[:C, :]                                   # f32 residual


def criss_cross_attention(x, wq, bq, wk, bk, wv, bv, gamma, *,
                          num_heads, tn_target=2048):
    B, C, H, W = x.shape
    assert C % num_heads == 0
    head_dim = C // num_heads
    N = H * W

    # Lane tiling: pad N to a multiple of 128, split into ~tn_target tiles.
    n128 = _round_up(N, 128)
    nt = max(1, (n128 + tn_target - 1) // tn_target)
    TN = _round_up((n128 + nt - 1) // nt, 128)
    nt = (n128 + TN - 1) // TN
    n_pad = TN * nt
    pad = n_pad - N

    # Augmented x: extra "ones" row (0 on padded cols) so the biases ride the
    # matmul and padded columns contribute exactly zero to the Grams.
    x_flat = x.reshape(B, C, N).astype(jnp.float32)
    x_aug = jnp.concatenate(
        [x_flat, jnp.ones((B, 1, N), jnp.float32)], axis=1)    # (B, C+1, N)
    if pad:
        x_aug = jnp.pad(x_aug, ((0, 0), (0, 0), (0, pad)))

    # Fused Q/K weights with their bias column; gamma folded into V weights.
    w_qk = jnp.concatenate(
        [jnp.concatenate([wq, bq[:, None]], axis=1),
         jnp.concatenate([wk, bk[:, None]], axis=1)],
        axis=0).astype(jnp.bfloat16)                           # (2C, C+1)
    w_v_g = (gamma * jnp.concatenate([wv, bv[:, None]], axis=1)
             ).astype(jnp.bfloat16)                            # (C, C+1)

    # ---- pass 1: per-batch mixing matrix M = softmax(Gram) @ (gamma Wv) ----
    m = pl.pallas_call(
        functools.partial(_gram_softmax_m_kernel,
                          num_heads=num_heads, head_dim=head_dim),
        out_shape=jax.ShapeDtypeStruct((B, C, C + 1), jnp.float32),
        grid=(B, nt),
        in_specs=[
            pl.BlockSpec((1, C + 1, TN), lambda b, n: (b, 0, n)),   # x_aug
            pl.BlockSpec((2 * C, C + 1), lambda b, n: (0, 0)),      # W_qk
            pl.BlockSpec((C, C + 1), lambda b, n: (0, 0)),          # gamma*W_v
        ],
        out_specs=pl.BlockSpec((1, C, C + 1), lambda b, n: (b, 0, 0)),
        scratch_shapes=[pltpu.VMEM((C, head_dim), jnp.float32)],
        compiler_params=pltpu.CompilerParams(
            dimension_semantics=("parallel", "arbitrary")),
    )(x_aug, w_qk, w_v_g)

    # ---- pass 2: out = M @ x_aug + x  (residual kept in f32) ---------------
    out_flat = pl.pallas_call(
        _apply_kernel,
        out_shape=jax.ShapeDtypeStruct((B, C, n_pad), jnp.float32),
        grid=(B, nt),
        in_specs=[
            pl.BlockSpec((1, C + 1, TN), lambda b, n: (b, 0, n)),   # x_aug
            pl.BlockSpec((1, C, C + 1), lambda b, n: (b, 0, 0)),    # M
        ],
        out_specs=pl.BlockSpec((1, C, TN), lambda b, n: (b, 0, n)),
        compiler_params=pltpu.CompilerParams(
            dimension_semantics=("parallel", "parallel")),
    )(x_aug, m)

    return out_flat[:, :, :N].reshape(B, C, H, W)


def _reference(x, wq, bq, wk, bk, wv, bv, gamma, *, num_heads):
    """Pure-JAX replica of the PyTorch forward (f32) for verification."""
    B, C, H, W = x.shape
    hd = C // num_heads
    N = H * W
    xf = x.reshape(B, C, N)

    def conv1x1(w, b):
        return jnp.einsum("oc,bcn->bon", w, xf) + b[None, :, None]

    q = conv1x1(wq, bq).reshape(B, num_heads, hd, N)
    k = conv1x1(wk, bk).reshape(B, num_heads, hd, N)
    v = conv1x1(wv, bv).reshape(B, num_heads, hd, N)

    attn = jnp.einsum("bhdn,bhen->bhde", q, k)          # (B, nh, hd, hd)
    attn = jax.nn.softmax(attn, axis=-1)
    out = jnp.einsum("bhde,bhen->bhdn", attn, v).reshape(B, C, H, W)
    return gamma * out + x


def _run_case(key, B, C, H, W, num_heads):
    kx, kwq, kbq, kwk, kbk, kwv, kbv = jax.random.split(key, 7)
    x = jax.random.normal(kx, (B, C, H, W), dtype=jnp.float32)
    wq = jax.random.normal(kwq, (C, C), dtype=jnp.float32) * 0.1
    bq = jax.random.normal(kbq, (C,), dtype=jnp.float32) * 0.1
    wk = jax.random.normal(kwk, (C, C), dtype=jnp.float32) * 0.1
    bk = jax.random.normal(kbk, (C,), dtype=jnp.float32) * 0.1
    wv = jax.random.normal(kwv, (C, C), dtype=jnp.float32) * 0.1
    bv = jax.random.normal(kbv, (C,), dtype=jnp.float32) * 0.1
    gamma = jnp.float32(0.5)   # PyTorch init is zeros(1); 0.5 exercises attention.

    out = criss_cross_attention(x, wq, bq, wk, bk, wv, bv, gamma,
                                num_heads=num_heads)
    out = jax.block_until_ready(out)

    ref = _reference(x, wq, bq, wk, bk, wv, bv, gamma, num_heads=num_heads)
    assert out.shape == (B, C, H, W)
    err = jnp.max(jnp.abs(out - ref))
    # bf16 MXU operands (weights + in-kernel casts) -> loose but safe tolerance.
    assert jnp.allclose(out, ref, atol=2e-2, rtol=2e-2), f"max abs err = {err}"


if __name__ == "__main__":
    key = jax.random.PRNGKey(0)
    k1, k2 = jax.random.split(key)

    # Main case: B=2, C=4, 16x16 spatial, 2 heads (N = 256, no padding).
    _run_case(k1, B=2, C=4, H=16, W=16, num_heads=2)
    # Padding path: N = 100 -> padded to 128 lanes.
    _run_case(k2, B=1, C=4, H=10, W=10, num_heads=2)

    print("KERNEL_OK")
</pallas_src>

<mosaic_0001>
module attributes {stable_mosaic.version = 11 : i64} {
  func.func @_gram_softmax_m_kernel(%arg0: i32, %arg1: i32, %arg2: memref<1x5x256xf32, #tpu.memory_space<vmem>>, %arg3: memref<8x5xbf16, #tpu.memory_space<vmem>>, %arg4: memref<4x5xbf16, #tpu.memory_space<vmem>>, %arg5: memref<1x4x5xf32, #tpu.memory_space<vmem>>, %arg6: memref<4x2xf32, #tpu.memory_space<vmem>>) attributes {dimension_semantics = [#tpu.dimension_semantics<parallel>, #tpu.dimension_semantics<arbitrary>], iteration_bounds = array<i64: 2, 1>, scalar_prefetch = 0 : i64, scratch_operands = 1 : i64, tpu.core_type = #tpu.core_type<tc>, window_params = [{transform_indices = @transform_0, window_bounds = array<i64: 1, 5, 256>}, {pipeline_mode = #tpu.pipeline_mode<synchronous>, transform_indices = @transform_1, window_bounds = array<i64: 8, 5>}, {pipeline_mode = #tpu.pipeline_mode<synchronous>, transform_indices = @transform_2, window_bounds = array<i64: 4, 5>}, {transform_indices = @transform_3, window_bounds = array<i64: 1, 4, 5>}]} {
    %c0_i32 = arith.constant 0 : i32
    %0 = arith.cmpi eq, %arg1, %c0_i32 : i32
    %1 = arith.extui %0 : i1 to i32
    %c0_i32_0 = arith.constant 0 : i32
    %2 = arith.cmpi ne, %1, %c0_i32_0 : i32
    scf.if %2 {
      %cst_16 = arith.constant 0.000000e+00 : f32
      %23 = vector.broadcast %cst_16 : f32 to vector<4x2xf32>
      %c0_17 = arith.constant 0 : index
      %c0_18 = arith.constant 0 : index
      %24 = vector.load %arg6[%c0_17, %c0_18] : memref<4x2xf32, #tpu.memory_space<vmem>>, vector<4x2xf32>
      tpu.vector_store %arg6[%c0_17, %c0_18], %23 {strides = array<i32>} : memref<4x2xf32, #tpu.memory_space<vmem>>, vector<4x2xf32>,
    } else {
    }
    %c0 = arith.constant 0 : index
    %c0_1 = arith.constant 0 : index
    %c0_2 = arith.constant 0 : index
    %3 = vector.load %arg2[%c0, %c0_1, %c0_2] : memref<1x5x256xf32, #tpu.memory_space<vmem>>, vector<1x5x256xf32>
    %4 = vector.shape_cast %3 : vector<1x5x256xf32> to vector<5x256xf32>
    %5 = arith.truncf %4 : vector<5x256xf32> to vector<5x256xbf16>
    %c0_3 = arith.constant 0 : index
    %c0_4 = arith.constant 0 : index
    %6 = vector.load %arg3[%c0_3, %c0_4] : memref<8x5xbf16, #tpu.memory_space<vmem>>, vector<8x5xbf16>
    %cst = arith.constant dense<0.000000e+00> : vector<8x256xf32>
    %7 = tpu.matmul %6, %5, %cst {dimension_numbers = #tpu.dot_dimension_numbers<[1], [0], [0], [1], [0, 0, 1, 1], [], []>} : vector<8x5xbf16>, vector<5x256xbf16>, vector<8x256xf32> -> vector<8x256xf32>
    %8 = vector.extract_strided_slice %7 {offsets = [0, 0], sizes = [2, 256], strides = [1, 1]} : vector<8x256xf32> to vector<2x256xf32>
    %9 = vector.extract_strided_slice %7 {offsets = [4, 0], sizes = [2, 256], strides = [1, 1]} : vector<8x256xf32> to vector<2x256xf32>
    %c0_5 = arith.constant 0 : index
    %c0_6 = arith.constant 0 : index
    %10 = vector.load %arg6[%c0_5, %c0_6] : memref<4x2xf32, #tpu.memory_space<vmem>>, vector<2x2xf32>
    %cst_7 = arith.constant dense<0.000000e+00> : vector<2x2xf32>
    %11 = tpu.matmul %8, %9, %cst_7 {dimension_numbers = #tpu.dot_dimension_numbers<[1], [1], [0], [0], [0, 0, 1, 0], [], []>} : vector<2x256xf32>, vector<2x256xf32>, vector<2x2xf32> -> vector<2x2xf32>
    %12 = arith.addf %10, %11 : vector<2x2xf32>
    %c0_8 = arith.constant 0 : index
    %c0_9 = arith.constant 0 : index
    %13 = vector.load %arg6[%c0_8, %c0_9] : memref<4x2xf32, #tpu.memory_space<vmem>>, vector<2x2xf32>
    tpu.vector_store %arg6[%c0_8, %c0_9], %12 {strides = array<i32>} : memref<4x2xf32, #tpu.memory_space<vmem>>, vector<2x2xf32>,
    %14 = vector.extract_strided_slice %7 {offsets = [2, 0], sizes = [2, 256], strides = [1, 1]} : vector<8x256xf32> to vector<2x256xf32>
    %15 = vector.extract_strided_slice %7 {offsets = [6, 0], sizes = [2, 256], strides = [1, 1]} : vector<8x256xf32> to vector<2x256xf32>
    %c2 = arith.constant 2 : index
    %c0_10 = arith.constant 0 : index
    %16 = vector.load %arg6[%c2, %c0_10] : memref<4x2xf32, #tpu.memory_space<vmem>>, vector<2x2xf32>
    %cst_11 = arith.constant dense<0.000000e+00> : vector<2x2xf32>
    %17 = tpu.matmul %14, %15, %cst_11 {dimension_numbers = #tpu.dot_dimension_numbers<[1], [1], [0], [0], [0, 0, 1, 0], [], []>} : vector<2x256xf32>, vector<2x256xf32>, vector<2x2xf32> -> vector<2x2xf32>
    %18 = arith.addf %16, %17 : vector<2x2xf32>
    %c2_12 = arith.constant 2 : index
    %c0_13 = arith.constant 0 : index
    %19 = vector.load %arg6[%c2_12, %c0_13] : memref<4x2xf32, #tpu.memory_space<vmem>>, vector<2x2xf32>
    tpu.vector_store %arg6[%c2_12, %c0_13], %18 {strides = array<i32>} : memref<4x2xf32, #tpu.memory_space<vmem>>, vector<2x2xf32>,
    %c0_i32_14 = arith.constant 0 : i32
    %20 = arith.cmpi eq, %arg1, %c0_i32_14 : i32
    %21 = arith.extui %20 : i1 to i32
    %c0_i32_15 = arith.constant 0 : i32
    %22 = arith.cmpi ne, %21, %c0_i32_15 : i32
    scf.if %22 {
      %c0_16 = arith.constant 0 : index
      %c0_17 = arith.constant 0 : index
      %23 = vector.load %arg6[%c0_16, %c0_17] : memref<4x2xf32, #tpu.memory_space<vmem>>, vector<4x2xf32>
      %cst_18 = arith.constant dense<0xFF800000> : vector<4xf32>
      %24 = vector.multi_reduction <maximumf>, %23, %cst_18 [1] : vector<4x2xf32> to vector<4xf32>
      %25 = vector.shape_cast %24 : vector<4xf32> to vector<4x1xf32>
      %26 = vector.broadcast %25 : vector<4x1xf32> to vector<4x2xf32>
      %27 = arith.subf %23, %26 : vector<4x2xf32>
      %28 = math.exp %27 : vector<4x2xf32>
      %cst_19 = arith.constant dense<0.000000e+00> : vector<4xf32>
      %29 = vector.multi_reduction <add>, %28, %cst_19 [1] : vector<4x2xf32> to vector<4xf32>
      %30 = vector.shape_cast %29 : vector<4xf32> to vector<4x1xf32>
      %31 = tpu.reciprocal %30 {approx = true} : vector<4x1xf32> -> vector<4x1xf32>
      %32 = vector.broadcast %31 : vector<4x1xf32> to vector<4x2xf32>
      %33 = arith.mulf %28, %32 : vector<4x2xf32>
      %34 = arith.truncf %33 : vector<4x2xf32> to vector<4x2xbf16>
      %35 = vector.extract_strided_slice %34 {offsets = [0, 0], sizes = [2, 2], strides = [1, 1]} : vector<4x2xbf16> to vector<2x2xbf16>
      %c0_20 = arith.constant 0 : index
      %c0_21 = arith.constant 0 : index
      %36 = vector.load %arg4[%c0_20, %c0_21] : memref<4x5xbf16, #tpu.memory_space<vmem>>, vector<2x5xbf16>
      %cst_22 = arith.constant dense<0.000000e+00> : vector<2x5xf32>
      %37 = tpu.matmul %35, %36, %cst_22 {dimension_numbers = #tpu.dot_dimension_numbers<[1], [0], [0], [1], [0, 0, 1, 1], [], []>} : vector<2x2xbf16>, vector<2x5xbf16>, vector<2x5xf32> -> vector<2x5xf32>
      %c0_23 = arith.constant 0 : index
      %c0_24 = arith.constant 0 : index
      %c0_25 = arith.constant 0 : index
      %38 = vector.load %arg5[%c0_23, %c0_24, %c0_25] : memref<1x4x5xf32, #tpu.memory_space<vmem>>, vector<1x2x5xf32>
      %39 = vector.shape_cast %38 : vector<1x2x5xf32> to vector<2x5xf32>
      %40 = vector.shape_cast %37 : vector<2x5xf32> to vector<1x2x5xf32>
      tpu.vector_store %arg5[%c0_23, %c0_24, %c0_25], %40 {strides = array<i32>} : memref<1x4x5xf32, #tpu.memory_space<vmem>>, vector<1x2x5xf32>,
      %41 = vector.extract_strided_slice %34 {offsets = [2, 0], sizes = [2, 2], strides = [1, 1]} : vector<4x2xbf16> to vector<2x2xbf16>
      %c2_26 = arith.constant 2 : index
      %c0_27 = arith.constant 0 : index
      %42 = vector.load %arg4[%c2_26, %c0_27] : memref<4x5xbf16, #tpu.memory_space<vmem>>, vector<2x5xbf16>
      %cst_28 = arith.constant dense<0.000000e+00> : vector<2x5xf32>
      %43 = tpu.matmul %41, %42, %cst_28 {dimension_numbers = #tpu.dot_dimension_numbers<[1], [0], [0], [1], [0, 0, 1, 1], [], []>} : vector<2x2xbf16>, vector<2x5xbf16>, vector<2x5xf32> -> vector<2x5xf32>
      %c0_29 = arith.constant 0 : index
      %c2_30 = arith.constant 2 : index
      %c0_31 = arith.constant 0 : index
      %44 = vector.load %arg5[%c0_29, %c2_30, %c0_31] : memref<1x4x5xf32, #tpu.memory_space<vmem>>, vector<1x2x5xf32>
      %45 = vector.shape_cast %44 : vector<1x2x5xf32> to vector<2x5xf32>
      %46 = vector.shape_cast %43 : vector<2x5xf32> to vector<1x2x5xf32>
      tpu.vector_store %arg5[%c0_29, %c2_30, %c0_31], %46 {strides = array<i32>} : memref<1x4x5xf32, #tpu.memory_space<vmem>>, vector<1x2x5xf32>,
    } else {
    }
    return
  }
  func.func @transform_0(%arg0: i32, %arg1: i32) -> (i32, i32, i32) {
    %c0_i32 = arith.constant 0 : i32
    %c0_i32_0 = arith.constant 0 : i32
    return %arg0, %c0_i32, %arg1 : i32, i32, i32
  }
  func.func @transform_1(%arg0: i32, %arg1: i32) -> (i32, i32) {
    %c0_i32 = arith.constant 0 : i32
    %c0_i32_0 = arith.constant 0 : i32
    %c0_i32_1 = arith.constant 0 : i32
    return %c0_i32, %c0_i32_0 : i32, i32
  }
  func.func @transform_2(%arg0: i32, %arg1: i32) -> (i32, i32) {
    %c0_i32 = arith.constant 0 : i32
    %c0_i32_0 = arith.constant 0 : i32
    %c0_i32_1 = arith.constant 0 : i32
    return %c0_i32, %c0_i32_0 : i32, i32
  }
  func.func @transform_3(%arg0: i32, %arg1: i32) -> (i32, i32, i32) {
    %c0_i32 = arith.constant 0 : i32
    %c0_i32_0 = arith.constant 0 : i32
    %c0_i32_1 = arith.constant 0 : i32
    return %arg0, %c0_i32, %c0_i32_0 : i32, i32, i32
  }
}

</mosaic_0001>

<bundles_post_ra>
// kernel: tpu_custom_call.1
= control target key start
LH: loop header
LB: loop body
LE: loop exit
PB: predicated region body
PF: predicated region fallthrough
CT: control target
= control target key end

     0   :  { %8 = vsyncpa [#allocation4], 0  ;;  %s964_s0 = inlined_call_operand.vmem [shape: f32[2,5,256], index: 0, kind: input, shape index: {}]   ;;  %s965_s1 = inlined_call_operand.vmem [shape: bf16[8,5], index: 1, kind: input, shape index: {}]   ;;  %s966_s2 = inlined_call_operand.vmem [shape: bf16[4,5], index: 2, kind: input, shape index: {}]   ;;  %s967_s3 = inlined_call_operand.hbm [shape: f32[2,4,5], index: 3, kind: output, shape index: {}]  }
   0x1   :  { %10 = vsyncpa [#allocation4 + $0x1], 0  ;;  %s840_s12 = smov 0   ;;  %s842_s13 = smov 0  }
   0x2   :  { %s844_s14 = smov 0   ;;  %s846_s15 = smov 0  }
   0x3   :  { %s848_s16 = smov 0   ;;  %s850_s17 = smov 0  }
   0x4 LB: > { %s639_s18 = sadd.s32 4294967295, %s813_s17   ;;  %s640_s19 = sadd.s32 4294967294, %s813_s17   ;;  %s813_s17 = sphi %s850_s17, %s16_s17   ;;  %s809_s16 = sphi %s848_s16, %s974_s16   ;;  %s805_s15 = sphi %s846_s15, %s973_s15   ;;  %s801_s14 = sphi %s844_s14, %s972_s14   ;;  %s797_s13 = sphi %s842_s13, %s971_s13   ;;  %s793_s12 = sphi %s840_s12, %s970_s12  }
   0x5   : > { %s28_s20 = sadd.s32 1, %s809_s16  ;;  %s105_s21 = sadd.s32 1, %s801_s14 }
   0x6   : > { %p30_p0 = scmp.ge.s32.totalorder %s28_s20, 2  ;;  %p115_p1 = scmp.ne.s32.totalorder %s801_s14, %s797_s13 }
   0x7   : > { %p116_p2 = scmp.eq.s32.totalorder %s639_s18, 1  ;;  %p121_p3 = scmp.ne.s32.totalorder %s797_s13, %s793_s12 }
   0x8   : > { %s976_s20 = smov (%p30_p0, %s28_s20), 0  ;;  %p122_p5 = scmp.eq.s32.totalorder %s640_s19, 1 }
   0x9   : > { %p880_p4 = por %p116_p2, %p115_p1  ;;  %s102_s23 = ssub.s32 %s809_s16, %s976_s20 }
   0xa   : > { %p643_p6 = scmp.ge.s32.totalorder %s813_s17, 1  ;;  %p103_p7 = scmp.eq.s32.totalorder %s102_s23, 0 }
   0xb   : > { %p887_p8 = por %p122_p5, %p121_p3  ;;  %p159_p9 = scmp.lt.s32.totalorder %s813_s17, 3 }
   0xc   : > { %s893_s25 = scalar_select %p103_p7, %s801_s14, %s105_s21  }
   0xd   : > { %p160_p10 = pnand %p643_p6, %p159_p9 }
   0xe   : > { %p188_p11 = scmp.lt.s32.totalorder (!%p160_p10), %s805_s15, 1  ;;  %vm213_vm0 = vcmask (!%p160_p10), 1041408   ;;  %v815_v0 = vmov (!%p160_p10), 0   ;;  %vm214_vm1 = vcmask (!%p160_p10), 1042432   ;;  %v816_v1 = vmov (!%p160_p10), 65535   ;;  %s184_s10 = sand.u32 (!%p160_p10), 1, %s797_s13  }
   0xf   : > { %163 = sbr.rel (%p160_p10) target bundleno = 1025 (0x401), region = 32  ;;  %255 = vmatprep.mubr.bf16.mxu0 (!%p160_p10), %v815_v0  ;;  %v215_v2 = vsel (!%p160_p10), %vm213_vm0, 4294967295, %v816_v1  ;;  %v208_v10 = vld [vmem:[%s965_s1] sm:$0xf] (!%p160_p10)  ;;  %vm209_vm2 = vcmask (!%p160_p10), 39936   ;;  %vm202_vm3 = vcmask (!%p160_p10), 11264  }
  0x10   : > { %v216_v4 = vsel (!%p160_p10), %vm214_vm1, %v215_v2, 0  ;;  %v817_v11 = vmov (!%p160_p10), 0.0   ;;  %vm342_vm4 = vcmask (!%p160_p10), 9216   ;;  %v442_v37 = vld [vmem:[%s966_s2] sm:$0x1] (!%p160_p10)  ;;  %vm447_vm5 = vcmask (!%p160_p10), 1040384  }
  0x11   : > { %203 = vst.msk [vmem:[#allocation2] sm:$0xf] (!%p160_p10), %vm202_vm3, %v817_v11  ;;  %v449_v38 = vsel (!%p160_p10), %vm447_vm5, %v442_v37, 0  ;;  %vm818_vm6 = vmmov (!%p160_p10), 0   ;;  %vm443_vm7 = vcmask (!%p160_p10), 15360   ;;  %s644_s11 = sshll.u32 (!%p160_p10), %s184_s10, 2 }
  0x12   : > { %v649_v39 = vld.sshfl [vmem:[%s966_s2] sm:$0x2 pattern:$0x76325410] (!%p160_p10)  ;;  %vm491_vm8 = vcmask (!%p160_p10), 33792   ;;  %s652_s18 = sshll.u32 (!%p160_p10), %s805_s15, 6 }
  0x13   : > { %v504_v40 = vrot.slane (!%p160_p10), %v649_v39, 1  ;;  %s186_s19 = scalar_lea.vmem (!%p160_p10), [#allocation3], %s644_s11  ;;  %s819_s29 = smov (!%p160_p10), [#allocation3]  }
  0x14   : > { %s566_s21 = sshll.u32 (!%p160_p10), %s186_s19, 4  ;;  %s919_s21 = int_to_ptr.vmem [resolvable:$true] %s566_s21 }
  0x15   : > { %v509_v41 = vsel (!%p160_p10), %vm447_vm5, %v504_v40, 0  ;;  %s735_s28 = scalar_lea.vmem (!%p160_p10), %s919_s21, 64 }
  0x16   : > { %s189_s26 = scalar_select %p188_p11, %s805_s15, 1 }
  0x17   : > { %s553_s15 = scalar_lea.sflag [#allocation4], %s184_s10  ;;  %p736_p12 = scmp.ne.s32.totalorder %s919_s21, %s735_s28 }
  0x18   : > { %s655_s27 = sshll.u32 %s189_s26, 4  ;;  %v264_v22 = vld [vmem:[#allocation2] sm:$0x3]  ;;  %v344_v26 = vld [vmem:[#allocation2 + $0x2] sm:$0x3] }
  0x19   : > { %s195_s30 = scalar_lea.vmem %s964_s0, %s655_s27  ;;  %s917_s27 = scalar_lea.hbm %s967_s3, %s652_s18 }
  0x1a   : > { %v205_v3 = vld [vmem:[%s195_s30 + $0x8] sm:$0x1f]  ;;  %v204_v5 = vld [vmem:[%s195_s30] sm:$0x1f]  ;;  %p737_p13 = pnand %p736_p12, %p880_p4  ;;  %s739_s30 = sshll.u32 %s819_s29, 4  ;;  %s740_s30 = int_to_ptr.vmem [resolvable:$false] %s739_s30 }
  0x1b   : > { %v207_v6 = vpack.c.bf16 %v205_v3, %v205_v3  ;;  %v206_v7 = vpack.c.bf16 %v204_v5, %v204_v5  ;;  %s741_s4 = scalar_lea.vmem %s740_s30, 128  ;;  %p742_p1 = scmp.lt.s32.totalorder %s919_s21, %s740_s30 }
  0x1c   : > { %p738_p0 = pneg %p737_p13  ;;  %p743_p2 = scmp.lt.s32.totalorder %s741_s4, %s735_s28 }
  0x1d   : > { %v221_v8 = vand.u32 %v216_v4, %v207_v6  ;;  %v218_v9 = vand.u32 %v216_v4, %v206_v7 }
  0x1e   : > { %p744_p3 = por %p743_p2, %p742_p1 }
  0x1f   : > { %223 = vmatprep.subr.bf16.mxu0 %v221_v8 }
  0x20   : > { %224 = vmatpush1.bf16.msra.mxu0 %v218_v9  ;;  %p745_p5 = pnand %p744_p3, %p738_p0 }
  0x21   : > { %660 = vmatprep.subr.bf16.mxu0 %v817_v11 }
  0x23   : > { %647 = vmatmul.mubr.msk.bf16.vlgmr.msra.gmra.mrb[0].mxu0 %vm209_vm2, %v208_v10 }
  0x24   : > { %661 = vmatpush3.bf16.msra.mxu0 %v449_v38  ;;  %662 = vmatprep.mubr.msk.bf16.mxu0 %vm818_vm6, %v817_v11 }
  0xf6   : > { %v257_v12 = vpop.f32.mrb[0].mxu0 }
  0xf7   : > { %v259_v13 = vpop.f32.mrb[1].mxu0  ;;  %v267_v17 = vrot.slane %v257_v12, 4  ;;  %v349_v19 = vrot.slane %v257_v12, 6  ;;  %v345_v21 = vrot.slane %v257_v12, 2 }
  0xf8   : > { %v261_v14 = vpop.f32.mrb[2].mxu0  ;;  %335 = vmatprep.mubr.f32.mxu1 %v259_v13  ;;  %v268_v15 = vrot.slane %v259_v13, 4  ;;  %v350_v18 = vrot.slane %v259_v13, 6  ;;  %v346_v20 = vrot.slane %v259_v13, 2 }
  0xf9   : > { %v262_v16 = vpop.f32.mrb[3].mxu0 }
  0xfa   : > { %271 = vmatprep.subr.mxu1 %v268_v15 }
  0xfb   : > { %272 = vmatpush1.xpose.msra.mxu1 %v267_v17 }
  0xfc   : > { %353 = vmatprep.subr.mxu1 %v350_v18 }
  0xfe   : > { %336 = vmatmul.mubr.f32.vlgmr.msra.gmra.mrb[0].mxu1 %v257_v12 }
  0xff   : > { %354 = vmatpush1.xpose.msra.mxu1 %v349_v19  ;;  %417 = vmatprep.mubr.f32.mxu1 %v346_v20 }
 0x100   : > { %666 = vmatprep.subr.bf16.mxu1 %v817_v11 }
 0x102   : > { %418 = vmatmul.mubr.f32.vlgmr.msra.gmra.mrb[2].mxu1 %v345_v21 }
 0x103   : > { %668 = vmatprep.mubr.msk.bf16.mxu1 %vm818_vm6, %v817_v11  ;;  %667 = vmatpush3.bf16.msra.mxu1 %v509_v41 }
 0x1d1   : > { %v337_v23 = vpop.f32.mrb[0].mxu1 }
 0x1d2   : > { %v341_v24 = vadd.f32 %v337_v23, %v264_v22  ;;  %v339_v25 = vpop.f32.mrb[1].mxu1 }
 0x1d4   : > { %343 = vst.msk [vmem:[#allocation2] sm:$0x3] %vm342_vm4, %v341_v24 }
 0x1d5   : > { %v419_v27 = vpop.f32.mrb[2].mxu1 }
 0x1d6   : > { %v423_v28 = vadd.f32 %v419_v27, %v344_v26  ;;  %v421_v29 = vpop.f32.mrb[3].mxu1 }
 0x1d8   : > { %424 = vst.msk [vmem:[#allocation2 + $0x2] sm:$0x3] %vm342_vm4, %v423_v28 }
 0x1df   : > { %v428_v30 = vld [vmem:[#allocation2] sm:$0xf] }
 0x1e0   : > { %v430_v31 = vsel %vm202_vm3, %v428_v30, -inf }
 0x1e1   : > { %431 = vmax.xlane.f32.xlu0 %v430_v31 }
 0x26e   : > { %v432_v32 = vpop.xlane.xlu0 %431 }
 0x26f   : > { %v433_v33 = vsub.f32 %v428_v30, %v432_v32 }
 0x271   : > { %v434_v34 = vmul.f32 1.442695, %v433_v33 }
 0x273   : > { %731 = vpow2.f32 %v434_v34 }
 0x27d   : > { %v732_v35 = vpop.eup %731 }
 0x27e   : > { %v436_v36 = vsel %vm202_vm3, %v732_v35, 0.0 }
 0x27f   : > { %437 = vadd.xlane.f32.xlu0 %v436_v36 }
 0x30c   : > { %v438_v42 = vpop.xlane.xlu0 %437 }
 0x30d   : > { %733 = vrcp.f32 %v438_v42 }
 0x317   : > { %v734_v43 = vpop.eup %733 }
 0x318   : > { %v440_v44 = vmul.f32 %v734_v43, %v732_v35 }
 0x31a   : > { %v441_v45 = vpack.c.bf16 %v440_v44, %v440_v44 }
 0x31c   : > { %663 = vmatmul.mubr.msk.bf16.vlgmr.msra.gmra.mrb[4].mxu0 %vm443_vm7, %v441_v45  ;;  %v495_v46 = vrot.slane %v441_v45, 1 }
 0x31e   : > { %669 = vmatmul.mubr.msk.bf16.vlgmr.msra.gmra.mrb[4].mxu1 %vm443_vm7, %v495_v46 }
 0x3ef   : > { %v485_v47 = vpop.f32.mrb[4].mxu0 }
 0x3f0   : > { %492 = vst.msk [vmem:[%s186_s19] sm:$0x3] %vm491_vm8, %v485_v47  ;;  %v664_v48 = vpop.f32.mrb[5].mxu0 }
 0x3f1   : > { %v488_v49 = vpop.f32.mrb[6].mxu0  ;;  %v545_v50 = vpop.f32.mrb[4].mxu1 }
 0x3f2   : > { %551 = vst.msk [vmem:[%s186_s19 + $0x2] sm:$0x3] %vm491_vm8, %v545_v50  ;;  %v665_v51 = vpop.f32.mrb[7].mxu0  ;;  %v670_v52 = vpop.f32.mrb[5].mxu1 }
 0x3f3   : > { %v548_v53 = vpop.f32.mrb[6].mxu1 }
 0x3f4   : > { %748 = shalt.err (!%p745_p5)
}
 0x3f5   : > { %s749_s5 = scalar_lea.hbm %s917_s27, 64  ;;  %s753_s8 = scalar_lea.hbm %s967_s3, 128 }
 0x3f6   : > { %p750_p6 = scmp.ne.s32.totalorder %s917_s27, %s749_s5  ;;  %p754_p10 = scmp.lt.u32.totalorder %s917_s27, %s967_s3 }
 0x3f7   : > { %p755_p11 = scmp.lt.u32.totalorder %s753_s8, %s749_s5  ;;  %p757_p13 = scmp.lt.u32.totalorder %s749_s5, %s917_s27 }
 0x3f8   : > { %p751_p7 = pnand %p750_p6, %p880_p4 }
 0x3f9   : > { %p756_p12 = por %p755_p11, %p754_p10 }
 0x3fa   : > { %p752_p9 = pneg %p751_p7 }
 0x3fb   : > { %p758_p0 = por %p757_p13, %p756_p12 }
 0x3fd   : > { %p759_p1 = pnand %p758_p0, %p752_p9 }
 0x3ff   : > { %762 = shalt.err (!%p759_p1)
}
 0x400   : > { %672 = dma.vmem_to_hbm [thread:$0]  (%p880_p4), %s919_s21, 64, %s917_s27, %s553_s15   ;;  %v671_v54 = vpop.f32.mrb[7].mxu1 }
 0x401 PF: > { %p678_p2 = scmp.ge.s32.totalorder %s813_s17, 2  ;;  %s578_s11 = sand.u32 1, %s793_s12  }
 0x402   : > { %s579_s18 = scalar_lea.sflag [#allocation4], %s578_s11 }
 0x403   : > { %p675_p3 = pnand %p678_p2, %p887_p8 }
 0x405   : > { %788 = dma.done.wait (!%p675_p3), %s579_s18, 64  }
 0x406   : > { %790 = vsyncadd (!%p675_p3), %s579_s18, 4294967232  ;;  %s16_s17 = sadd.s32 1, %s813_s17   ;;  %s970_s12 = smov %s797_s13 }
 0x407   : > { %p13_p5 = scmp.ge.s32.totalorder %s16_s17, 4   ;;  %s971_s13 = smov %s801_s14 }
 0x408   : > { %s972_s14 = smov %s893_s25  ;;  %s973_s15 = smov %s809_s16 }
 0x409   : > { %s974_s16 = smov %s976_s20  ;;  %15 = sbr.rel (!%p13_p5) target bundleno = 4 (0x4), region = 75 }
 0x410   :  { %584 = vsyncpa [#allocation4], 1 }
 0x411   :  { %586 = vsyncpa [#allocation4 + $0x1], 1 }

</bundles_post_ra>
